<compile_context>
chip_gen: v7x
topology: tpu7x:2x2x1
jax: 0.10.0
libtpu: 0.0.40
codegen_flags: <defaults>
</compile_context>

<pallas_src>
import functools
import math

import jax
import jax.numpy as jnp
from jax.experimental import pallas as pl
from jax.experimental.pallas import tpu as pltpu

KH = KW = 3      # kernel_size = 3
STRIDE = 1
PADDING = 1
DILATION = 1


def _sublane(dtype):
    """Sublane tile rows for a dtype (8 for 32-bit, 16 for 16-bit packed)."""
    return 8 * (4 // jnp.dtype(dtype).itemsize)


def _form_taps_and_contract(xf_ref, w_ref, *, cin, h, w, kpad):
    """Build the 9-tap im2col block in VMEM and run one MXU contraction.

    xf_ref : (1, Cin, Lpad) vertically zero-padded, flattened activations,
             Lpad = (H+2)*W + 2 (one guard zero lane at front and back).
    w_ref  : (Cout, Kpad) BN-folded conv1+downsample fused weights, row order
             (kh, kw) outer / cin inner, zero-padded to the sublane tile.
    Returns (Cout, H*W) f32 pre-activation WITHOUT bias.
    """
    hw = h * w
    xf = xf_ref[0]                                            # (Cin, Lpad)

    # Lane-column index of every output position, for horizontal edge masks
    # (vertical edges are handled by the zero rows padded in the wrapper).
    col = jax.lax.broadcasted_iota(jnp.int32, (1, hw), 1) % w
    not_left = col != 0            # tap kw==0 reads column x-1 (invalid at x=0)
    not_right = col != (w - 1)     # tap kw==2 reads column x+1 (invalid at x=W-1)
    zero = jnp.zeros((), xf.dtype)

    taps = []
    for kh in range(KH):
        for kw in range(KW):
            s = kh * w + kw                                   # static lane offset
            t = xf[:, s:s + hw]                               # (Cin, HW)
            if kw == 0:
                t = jnp.where(not_left, t, zero)
            elif kw == 2:
                t = jnp.where(not_right, t, zero)
            taps.append(t)

    k = KH * KW * cin
    if kpad > k:
        # Pad the contraction dim to the sublane tile in VMEM only (never in HBM).
        taps.append(jnp.zeros((kpad - k, hw), xf.dtype))
    xs = jnp.concatenate(taps, axis=0)                        # (Kpad, HW)
    return jnp.dot(w_ref[...], xs, preferred_element_type=jnp.float32)


def _tb3_spike_kernel(xf_ref, w_ref, thrc_ref, spike_ref, *, cin, h, w, kpad):
    # Production path: bias folded into the per-channel threshold, spike-only.
    acc = _form_taps_and_contract(xf_ref, w_ref, cin=cin, h=h, w=w, kpad=kpad)
    spike_ref[0] = (acc >= thrc_ref[...]).astype(spike_ref.dtype)


def _tb3_debug_kernel(xf_ref, w_ref, b_ref, thr_ref, spike_ref, pre_ref, *,
                      cin, h, w, kpad):
    # Debug path: also writes the true pre-activation for numeric validation.
    acc = _form_taps_and_contract(xf_ref, w_ref, cin=cin, h=h, w=w, kpad=kpad)
    pre = acc + b_ref[...]
    pre_ref[0] = pre
    spike_ref[0] = (pre >= thr_ref[...]).astype(spike_ref.dtype)


def temporal_block3_forward(x_nchw, params, *, compute_dtype=jnp.bfloat16,
                            spike_dtype=jnp.bfloat16, return_pre=False):
    w1 = params["conv1_w"]          # (Cout, Cin, 3, 3), PyTorch OIHW
    w2 = params["ds_w"]             # (Cout, Cin, 3, 3)
    n, cin, h, w = x_nchw.shape
    cout = w1.shape[0]
    hw = h * w
    k = KH * KW * cin
    sub = _sublane(compute_dtype)
    kpad = -(-k // sub) * sub

    # ---- eval-mode BN folding + algebraic fusion of the two convs ----
    def fold_bn(p):
        scale = p["gamma"] / jnp.sqrt(p["var"] + p["eps"])
        bias = p["beta"] - p["mean"] * scale
        return scale.astype(jnp.float32), bias.astype(jnp.float32)

    s1, b1 = fold_bn(params["bn1"])
    s2, b2 = fold_bn(params["bn2"])
    # bn1(conv1(x)) + bn2(conv_ds(x)) == conv(x; s1*W1 + s2*W2) + (b1 + b2)
    w_fused = (w1.astype(jnp.float32) * s1[:, None, None, None]
               + w2.astype(jnp.float32) * s2[:, None, None, None])
    w_k = jnp.transpose(w_fused, (0, 2, 3, 1)).reshape(cout, k)   # (kh,kw) outer
    w_k = jnp.pad(w_k, ((0, 0), (0, kpad - k))).astype(compute_dtype)
    b_fused = (b1 + b2).astype(jnp.float32)

    # PLIF single step from reset state (decay_input=True, v_reset=0):
    #   v = sigmoid(w) * pre ; spike = v >= vth   <=>   pre >= vth / sigmoid(w)
    decay = jax.nn.sigmoid(jnp.asarray(params["plif_w"], jnp.float32))
    thresh = jnp.asarray(params["v_threshold"], jnp.float32) / decay
    thr_c = (thresh - b_fused).reshape(cout, 1)     # bias folded into threshold
    b_col = b_fused.reshape(cout, 1)
    thr_full = thresh.reshape(1, 1)

    # ---- input layout: vertical zero-pad only, flatten, 1-lane guard pads ----
    # Flat index of padded (r, c) is 1 + r*W + c, so tap (kh, kw) of output
    # position p = y*W + x sits at static lane offset kh*W + kw from p.
    xp = jnp.pad(x_nchw, ((0, 0), (0, 0), (PADDING, PADDING), (0, 0)))
    xf = xp.reshape(n, cin, (h + 2) * w)
    xf = jnp.pad(xf, ((0, 0), (0, 0), (1, 1))).astype(compute_dtype)
    lpad = (h + 2) * w + 2

    kernel_kw = dict(cin=cin, h=h, w=w, kpad=kpad)
    if return_pre:
        kernel = functools.partial(_tb3_debug_kernel, **kernel_kw)
        extra_inputs = (b_col, thr_full)
        extra_in_specs = [pl.BlockSpec((cout, 1), lambda i: (0, 0)),
                          pl.BlockSpec((1, 1), lambda i: (0, 0))]
        out_shapes = (jax.ShapeDtypeStruct((n, cout, hw), spike_dtype),
                      jax.ShapeDtypeStruct((n, cout, hw), jnp.float32))
        out_specs = (pl.BlockSpec((1, cout, hw), lambda i: (i, 0, 0)),
                     pl.BlockSpec((1, cout, hw), lambda i: (i, 0, 0)))
    else:
        kernel = functools.partial(_tb3_spike_kernel, **kernel_kw)
        extra_inputs = (thr_c,)
        extra_in_specs = [pl.BlockSpec((cout, 1), lambda i: (0, 0))]
        out_shapes = (jax.ShapeDtypeStruct((n, cout, hw), spike_dtype),)
        out_specs = (pl.BlockSpec((1, cout, hw), lambda i: (i, 0, 0)),)

    outs = pl.pallas_call(
        kernel,
        out_shape=out_shapes,
        grid_spec=pltpu.PrefetchScalarGridSpec(
            num_scalar_prefetch=0,
            grid=(n,),                        # one image per step; N=2 -> even
            in_specs=[
                pl.BlockSpec((1, cin, lpad), lambda i: (i, 0, 0)),   # activations
                pl.BlockSpec((cout, kpad), lambda i: (0, 0)),        # fused weights
                *extra_in_specs,
            ],
            out_specs=out_specs,
        ),
        compiler_params=pltpu.CompilerParams(
            dimension_semantics=("parallel",),
            vmem_limit_bytes=32 * 1024 * 1024),
    )(xf, w_k, *extra_inputs)

    spike = outs[0].reshape(n, cout, h, w)          # already NCHW, lane-dense
    if return_pre:
        return spike, outs[1].reshape(n, cout, h, w)
    return spike


def reference_forward(x_nchw, params):
    """Pure-JAX reference (XLA convs) with identical semantics, for validation."""
    dn = ("NCHW", "OIHW", "NCHW")

    def bn(y, p):
        scale = (p["gamma"] / jnp.sqrt(p["var"] + p["eps"])).reshape(1, -1, 1, 1)
        bias = (p["beta"] - p["mean"] * p["gamma"]
                / jnp.sqrt(p["var"] + p["eps"])).reshape(1, -1, 1, 1)
        return y * scale + bias

    y1 = jax.lax.conv_general_dilated(
        x_nchw, params["conv1_w"], (STRIDE, STRIDE),
        ((PADDING, PADDING), (PADDING, PADDING)),
        rhs_dilation=(DILATION, DILATION), dimension_numbers=dn)
    y1 = bn(y1, params["bn1"])
    y2 = jax.lax.conv_general_dilated(
        x_nchw, params["ds_w"], (STRIDE, STRIDE),
        ((1, 1), (1, 1)), rhs_dilation=(1, 1), dimension_numbers=dn)
    y2 = bn(y2, params["bn2"])
    pre = y1 + y2
    decay = 1.0 / (1.0 + math.exp(-params["plif_w"]))
    spike = (decay * pre >= params["v_threshold"]).astype(jnp.float32)
    return spike, pre


if __name__ == "__main__":
    # Small shapes consistent with the module: N=2, Cin=4, Cout=8, H=W=16,
    # kernel_size=3, stride=1, padding=1, dilation=1.
    n, cin, cout, h, w = 2, 4, 8, 16, 16
    key = jax.random.PRNGKey(0)
    ks = jax.random.split(key, 12)

    x = jax.random.normal(ks[0], (n, cin, h, w), jnp.float32)
    params = {
        "conv1_w": 0.3 * jax.random.normal(ks[1], (cout, cin, KH, KW), jnp.float32),
        "ds_w": 0.3 * jax.random.normal(ks[2], (cout, cin, KH, KW), jnp.float32),
        "bn1": {
            "gamma": 1.0 + 0.1 * jax.random.normal(ks[3], (cout,), jnp.float32),
            "beta": 0.1 * jax.random.normal(ks[4], (cout,), jnp.float32),
            "mean": 0.1 * jax.random.normal(ks[5], (cout,), jnp.float32),
            "var": 0.5 + jax.random.uniform(ks[6], (cout,), jnp.float32),
            "eps": 1e-5,
        },
        "bn2": {
            "gamma": 1.0 + 0.1 * jax.random.normal(ks[7], (cout,), jnp.float32),
            "beta": 0.1 * jax.random.normal(ks[8], (cout,), jnp.float32),
            "mean": 0.1 * jax.random.normal(ks[9], (cout,), jnp.float32),
            "var": 0.5 + jax.random.uniform(ks[10], (cout,), jnp.float32),
            "eps": 1e-5,
        },
        "plif_w": -math.log(2.0 - 1.0),   # ParametricLIFNode init_tau=2.0 -> w=0
        "v_threshold": 1.0,
    }

    ref_spike, ref_pre = reference_forward(x, params)
    decay = 1.0 / (1.0 + math.exp(-params["plif_w"]))
    thresh = params["v_threshold"] / decay          # == 2.0 exactly here

    # 1) f32 debug run: tight validation of in-kernel im2col + fused algebra.
    spike32, pre32 = temporal_block3_forward(
        x, params, compute_dtype=jnp.float32, spike_dtype=jnp.float32,
        return_pre=True)
    spike32, pre32 = jax.block_until_ready((spike32, pre32))
    assert spike32.shape == (n, cout, h, w) and pre32.shape == (n, cout, h, w)
    assert jnp.allclose(pre32, ref_pre, atol=1e-4, rtol=1e-4), "f32 pre mismatch"
    assert jnp.array_equal(
        spike32, (pre32 >= thresh).astype(jnp.float32)), "f32 spike mismatch"
    near_ref = jnp.abs(ref_pre - thresh) < 1e-3
    assert bool(jnp.all((spike32 == ref_spike) | near_ref)), \
        "f32 spike vs reference mismatch"

    # 2) bf16 debug run (MXU dtype): loose tolerance on pre, spikes
    #    self-consistent with the kernel's own pre-activation.
    spike16d, pre16 = temporal_block3_forward(
        x, params, compute_dtype=jnp.bfloat16, spike_dtype=jnp.bfloat16,
        return_pre=True)
    spike16d, pre16 = jax.block_until_ready((spike16d, pre16))
    assert jnp.allclose(pre16, ref_pre, atol=0.25, rtol=0.05), "bf16 pre mismatch"
    assert jnp.array_equal(
        spike16d.astype(jnp.float32),
        (pre16 >= thresh).astype(jnp.float32)), "bf16 spike mismatch"

    # 3) Production path: bf16 compute, bf16 spike-only output, bias folded
    #    into a per-channel threshold inside the kernel.
    spike = temporal_block3_forward(x, params)
    spike = jax.block_until_ready(spike)
    assert spike.shape == (n, cout, h, w)
    assert spike.dtype == jnp.bfloat16
    # Bias-folded compare vs. explicit bias add may differ by 1 ulp exactly at
    # the threshold; only allow disagreement there.
    near_thr = jnp.abs(pre16 - thresh) < 1e-4
    agree = (spike.astype(jnp.float32) == spike16d.astype(jnp.float32)) | near_thr
    assert bool(jnp.all(agree)), "production/debug spike mismatch"

    print("KERNEL_OK")
</pallas_src>

<mosaic_0001>
module attributes {stable_mosaic.version = 11 : i64} {
  func.func @_tb3_debug_kernel(%arg0: i32, %arg1: memref<1x4x290xf32, #tpu.memory_space<vmem>>, %arg2: memref<8x40xf32, #tpu.memory_space<vmem>>, %arg3: memref<8x1xf32, #tpu.memory_space<vmem>>, %arg4: memref<1x1xf32, #tpu.memory_space<vmem>>, %arg5: memref<1x8x256xf32, #tpu.memory_space<vmem>>, %arg6: memref<1x8x256xf32, #tpu.memory_space<vmem>>) attributes {dimension_semantics = [#tpu.dimension_semantics<parallel>], iteration_bounds = array<i64: 2>, scalar_prefetch = 0 : i64, scratch_operands = 0 : i64, tpu.core_type = #tpu.core_type<tc>, window_params = [{transform_indices = @transform_0, window_bounds = array<i64: 1, 4, 290>}, {pipeline_mode = #tpu.pipeline_mode<synchronous>, transform_indices = @transform_1, window_bounds = array<i64: 8, 40>}, {pipeline_mode = #tpu.pipeline_mode<synchronous>, transform_indices = @transform_2, window_bounds = array<i64: 8, 1>}, {pipeline_mode = #tpu.pipeline_mode<synchronous>, transform_indices = @transform_3, window_bounds = array<i64: 1, 1>}, {transform_indices = @transform_4, window_bounds = array<i64: 1, 8, 256>}, {transform_indices = @transform_5, window_bounds = array<i64: 1, 8, 256>}]} {
    %c0 = arith.constant 0 : index
    %c0_0 = arith.constant 0 : index
    %c0_1 = arith.constant 0 : index
    %0 = vector.load %arg1[%c0, %c0_0, %c0_1] : memref<1x4x290xf32, #tpu.memory_space<vmem>>, vector<1x4x290xf32>
    %1 = vector.shape_cast %0 : vector<1x4x290xf32> to vector<4x290xf32>
    %2 = tpu.iota {dimensions = array<i32: 1>} : vector<1x256xi32>
    %c16_i32 = arith.constant 16 : i32
    %c0_i32 = arith.constant 0 : i32
    %3 = arith.cmpi eq, %c16_i32, %c0_i32 : i32
    %c1_i32 = arith.constant 1 : i32
    %4 = arith.select %3, %c1_i32, %c16_i32 : i32
    %5 = vector.broadcast %4 : i32 to vector<1x256xi32>
    %6 = arith.remsi %2, %5 : vector<1x256xi32>
    %c0_i32_2 = arith.constant 0 : i32
    %7 = vector.broadcast %c0_i32_2 : i32 to vector<1x256xi32>
    %8 = arith.cmpi ne, %6, %7 : vector<1x256xi32>
    %c0_i32_3 = arith.constant 0 : i32
    %9 = vector.broadcast %c0_i32_3 : i32 to vector<1x256xi32>
    %10 = arith.cmpi slt, %6, %9 : vector<1x256xi32>
    %c0_i32_4 = arith.constant 0 : i32
    %11 = arith.cmpi slt, %4, %c0_i32_4 : i32
    %12 = vector.broadcast %11 : i1 to vector<1x256xi1>
    %13 = vector.broadcast %12 : vector<1x256xi1> to vector<1x256xi1>
    %14 = arith.xori %10, %13 : vector<1x256xi1>
    %15 = arith.andi %14, %8 : vector<1x256xi1>
    %16 = vector.broadcast %4 : i32 to vector<1x256xi32>
    %17 = arith.addi %6, %16 : vector<1x256xi32>
    %18 = arith.select %15, %17, %6 : vector<1x256xi1>, vector<1x256xi32>
    %c0_i32_5 = arith.constant 0 : i32
    %19 = vector.broadcast %c0_i32_5 : i32 to vector<1x256xi32>
    %20 = arith.cmpi ne, %18, %19 : vector<1x256xi32>
    %c15_i32 = arith.constant 15 : i32
    %21 = vector.broadcast %c15_i32 : i32 to vector<1x256xi32>
    %22 = arith.cmpi ne, %18, %21 : vector<1x256xi32>
    %23 = vector.extract_strided_slice %1 {offsets = [0, 0], sizes = [4, 256], strides = [1, 1]} : vector<4x290xf32> to vector<4x256xf32>
    %cst = arith.constant 0.000000e+00 : f32
    %24 = vector.shape_cast %20 : vector<1x256xi1> to vector<1x256xi1>
    %25 = vector.broadcast %24 : vector<1x256xi1> to vector<4x256xi1>
    %26 = vector.broadcast %cst : f32 to vector<4x256xf32>
    %27 = arith.select %25, %23, %26 : vector<4x256xi1>, vector<4x256xf32>
    %28 = vector.extract_strided_slice %1 {offsets = [0, 1], sizes = [4, 256], strides = [1, 1]} : vector<4x290xf32> to vector<4x256xf32>
    %29 = vector.extract_strided_slice %1 {offsets = [0, 2], sizes = [4, 256], strides = [1, 1]} : vector<4x290xf32> to vector<4x256xf32>
    %cst_6 = arith.constant 0.000000e+00 : f32
    %30 = vector.shape_cast %22 : vector<1x256xi1> to vector<1x256xi1>
    %31 = vector.broadcast %30 : vector<1x256xi1> to vector<4x256xi1>
    %32 = vector.broadcast %cst_6 : f32 to vector<4x256xf32>
    %33 = arith.select %31, %29, %32 : vector<4x256xi1>, vector<4x256xf32>
    %34 = vector.extract_strided_slice %1 {offsets = [0, 16], sizes = [4, 256], strides = [1, 1]} : vector<4x290xf32> to vector<4x256xf32>
    %cst_7 = arith.constant 0.000000e+00 : f32
    %35 = vector.shape_cast %20 : vector<1x256xi1> to vector<1x256xi1>
    %36 = vector.broadcast %35 : vector<1x256xi1> to vector<4x256xi1>
    %37 = vector.broadcast %cst_7 : f32 to vector<4x256xf32>
    %38 = arith.select %36, %34, %37 : vector<4x256xi1>, vector<4x256xf32>
    %39 = vector.extract_strided_slice %1 {offsets = [0, 17], sizes = [4, 256], strides = [1, 1]} : vector<4x290xf32> to vector<4x256xf32>
    %40 = vector.extract_strided_slice %1 {offsets = [0, 18], sizes = [4, 256], strides = [1, 1]} : vector<4x290xf32> to vector<4x256xf32>
    %cst_8 = arith.constant 0.000000e+00 : f32
    %41 = vector.shape_cast %22 : vector<1x256xi1> to vector<1x256xi1>
    %42 = vector.broadcast %41 : vector<1x256xi1> to vector<4x256xi1>
    %43 = vector.broadcast %cst_8 : f32 to vector<4x256xf32>
    %44 = arith.select %42, %40, %43 : vector<4x256xi1>, vector<4x256xf32>
    %45 = vector.extract_strided_slice %1 {offsets = [0, 32], sizes = [4, 256], strides = [1, 1]} : vector<4x290xf32> to vector<4x256xf32>
    %cst_9 = arith.constant 0.000000e+00 : f32
    %46 = vector.shape_cast %20 : vector<1x256xi1> to vector<1x256xi1>
    %47 = vector.broadcast %46 : vector<1x256xi1> to vector<4x256xi1>
    %48 = vector.broadcast %cst_9 : f32 to vector<4x256xf32>
    %49 = arith.select %47, %45, %48 : vector<4x256xi1>, vector<4x256xf32>
    %50 = vector.extract_strided_slice %1 {offsets = [0, 33], sizes = [4, 256], strides = [1, 1]} : vector<4x290xf32> to vector<4x256xf32>
    %51 = vector.extract_strided_slice %1 {offsets = [0, 34], sizes = [4, 256], strides = [1, 1]} : vector<4x290xf32> to vector<4x256xf32>
    %cst_10 = arith.constant 0.000000e+00 : f32
    %52 = vector.shape_cast %22 : vector<1x256xi1> to vector<1x256xi1>
    %53 = vector.broadcast %52 : vector<1x256xi1> to vector<4x256xi1>
    %54 = vector.broadcast %cst_10 : f32 to vector<4x256xf32>
    %55 = arith.select %53, %51, %54 : vector<4x256xi1>, vector<4x256xf32>
    %cst_11 = arith.constant 0.000000e+00 : f32
    %56 = vector.broadcast %cst_11 : f32 to vector<4x256xf32>
    %57 = tpu.concatenate %27, %28, %33, %38, %39, %44, %49, %50, %55, %56 in 0 : vector<4x256xf32>, vector<4x256xf32>, vector<4x256xf32>, vector<4x256xf32>, vector<4x256xf32>, vector<4x256xf32>, vector<4x256xf32>, vector<4x256xf32>, vector<4x256xf32>, vector<4x256xf32> -> vector<40x256xf32>
    %c0_12 = arith.constant 0 : index
    %c0_13 = arith.constant 0 : index
    %58 = vector.load %arg2[%c0_12, %c0_13] : memref<8x40xf32, #tpu.memory_space<vmem>>, vector<8x40xf32>
    %cst_14 = arith.constant dense<0.000000e+00> : vector<8x256xf32>
    %59 = tpu.matmul %58, %57, %cst_14 {dimension_numbers = #tpu.dot_dimension_numbers<[1], [0], [0], [1], [0, 0, 1, 1], [], []>} : vector<8x40xf32>, vector<40x256xf32>, vector<8x256xf32> -> vector<8x256xf32>
    %c0_15 = arith.constant 0 : index
    %c0_16 = arith.constant 0 : index
    %60 = vector.load %arg3[%c0_15, %c0_16] : memref<8x1xf32, #tpu.memory_space<vmem>>, vector<8x1xf32>
    %61 = vector.broadcast %60 : vector<8x1xf32> to vector<8x256xf32>
    %62 = arith.addf %59, %61 : vector<8x256xf32>
    %c0_17 = arith.constant 0 : index
    %c0_18 = arith.constant 0 : index
    %c0_19 = arith.constant 0 : index
    %63 = vector.load %arg6[%c0_17, %c0_18, %c0_19] : memref<1x8x256xf32, #tpu.memory_space<vmem>>, vector<1x8x256xf32>
    %64 = vector.shape_cast %63 : vector<1x8x256xf32> to vector<8x256xf32>
    %65 = vector.shape_cast %62 : vector<8x256xf32> to vector<1x8x256xf32>
    tpu.vector_store %arg6[%c0_17, %c0_18, %c0_19], %65 {strides = array<i32>} : memref<1x8x256xf32, #tpu.memory_space<vmem>>, vector<1x8x256xf32>,
    %c0_20 = arith.constant 0 : index
    %c0_21 = arith.constant 0 : index
    %66 = vector.load %arg4[%c0_20, %c0_21] : memref<1x1xf32, #tpu.memory_space<vmem>>, vector<1x1xf32>
    %67 = vector.broadcast %66 : vector<1x1xf32> to vector<8x256xf32>
    %68 = arith.cmpf oge, %62, %67 : vector<8x256xf32>
    %69 = arith.extui %68 : vector<8x256xi1> to vector<8x256xi32>
    %70 = arith.sitofp %69 : vector<8x256xi32> to vector<8x256xf32>
    %c0_22 = arith.constant 0 : index
    %c0_23 = arith.constant 0 : index
    %c0_24 = arith.constant 0 : index
    %71 = vector.load %arg5[%c0_22, %c0_23, %c0_24] : memref<1x8x256xf32, #tpu.memory_space<vmem>>, vector<1x8x256xf32>
    %72 = vector.shape_cast %71 : vector<1x8x256xf32> to vector<8x256xf32>
    %73 = vector.shape_cast %70 : vector<8x256xf32> to vector<1x8x256xf32>
    tpu.vector_store %arg5[%c0_22, %c0_23, %c0_24], %73 {strides = array<i32>} : memref<1x8x256xf32, #tpu.memory_space<vmem>>, vector<1x8x256xf32>,
    return
  }
  func.func @transform_0(%arg0: i32) -> (i32, i32, i32) {
    %c0_i32 = arith.constant 0 : i32
    %c0_i32_0 = arith.constant 0 : i32
    %c0_i32_1 = arith.constant 0 : i32
    return %arg0, %c0_i32, %c0_i32_0 : i32, i32, i32
  }
  func.func @transform_1(%arg0: i32) -> (i32, i32) {
    %c0_i32 = arith.constant 0 : i32
    %c0_i32_0 = arith.constant 0 : i32
    %c0_i32_1 = arith.constant 0 : i32
    return %c0_i32, %c0_i32_0 : i32, i32
  }
  func.func @transform_2(%arg0: i32) -> (i32, i32) {
    %c0_i32 = arith.constant 0 : i32
    %c0_i32_0 = arith.constant 0 : i32
    %c0_i32_1 = arith.constant 0 : i32
    return %c0_i32, %c0_i32_0 : i32, i32
  }
  func.func @transform_3(%arg0: i32) -> (i32, i32) {
    %c0_i32 = arith.constant 0 : i32
    %c0_i32_0 = arith.constant 0 : i32
    %c0_i32_1 = arith.constant 0 : i32
    return %c0_i32, %c0_i32_0 : i32, i32
  }
  func.func @transform_4(%arg0: i32) -> (i32, i32, i32) {
    %c0_i32 = arith.constant 0 : i32
    %c0_i32_0 = arith.constant 0 : i32
    %c0_i32_1 = arith.constant 0 : i32
    return %arg0, %c0_i32, %c0_i32_0 : i32, i32, i32
  }
  func.func @transform_5(%arg0: i32) -> (i32, i32, i32) {
    %c0_i32 = arith.constant 0 : i32
    %c0_i32_0 = arith.constant 0 : i32
    %c0_i32_1 = arith.constant 0 : i32
    return %arg0, %c0_i32, %c0_i32_0 : i32, i32, i32
  }
}

</mosaic_0001>

<bundles_post_ra>
// kernel: tpu_custom_call.1
= control target key start
LH: loop header
LB: loop body
LE: loop exit
PB: predicated region body
PF: predicated region fallthrough
CT: control target
= control target key end

     0   :  { %s1251_s0 = inlined_call_operand.hbm [shape: f32[2,4,290], index: 0, kind: input, shape index: {}]   ;;  %s1252_s1 = inlined_call_operand.vmem [shape: f32[8,40], index: 1, kind: input, shape index: {}]   ;;  %s1253_s2 = inlined_call_operand.vmem [shape: f32[8,1], index: 2, kind: input, shape index: {}]   ;;  %s1254_s3 = inlined_call_operand.<no memory space> [shape: f32[1,1], index: 3, kind: input, shape index: {}]   ;;  %s1255_s4 = inlined_call_operand.hbm [shape: f32[2,8,256], index: 4, kind: output, shape index: {0}]   ;;  %s1256_s5 = inlined_call_operand.hbm [shape: f32[2,8,256], index: 5, kind: output, shape index: {1}]  }
   0x1   :  { %v11_v0 = vstv %s1254_s3 }
   0x2   :  { %12 = vst [vmem:[#allocation2] sm:$0x1] %v11_v0 }
   0x3   :  { %13 = vsyncpa [#allocation4], 0 }
   0x4   :  { %15 = vsyncpa [#allocation4 + $0x1], 0 }
   0x5   :  { %16 = vsyncpa [#allocation5], 0 }
   0x6   :  { %18 = vsyncpa [#allocation5 + $0x1], 0 }
   0x7   :  { %19 = vsyncpa [#allocation8], 0 }
   0x8   :  { %21 = vsyncpa [#allocation8 + $0x1], 0  ;;  %s973_s20 = smov 0   ;;  %s975_s21 = smov 0  }
   0x9   :  { %s977_s22 = smov 0   ;;  %s979_s23 = smov 0  }
   0xa LB: > { %s994_s3 = sadd.s32 4294967295, %s925_s23   ;;  %s662_s24 = sadd.s32 4294967294, %s925_s23   ;;  %s925_s23 = sphi %s979_s23, %s1278_s23   ;;  %s921_s22 = sphi %s977_s22, %s1277_s22   ;;  %s917_s21 = sphi %s975_s21, %s1276_s21   ;;  %s913_s20 = sphi %s973_s20, %s1275_s20  }
   0xb   : > { %s998_s25 = sadd.s32 1, %s925_s23   ;;  %s34_s26 = sadd.s32 1, %s921_s22 }
   0xc   : > { %s31_s27 = ssub.s32 %s925_s23, %s998_s25  ;;  %p41_p0 = scmp.ne.s32.totalorder %s921_s22, %s917_s21 }
   0xd   : > { %p32_p1 = scmp.eq.s32.totalorder %s31_s27, 0  ;;  %p42_p2 = scmp.eq.s32.totalorder %s925_s23, 0 }
   0xe   : > { %p47_p3 = scmp.ne.s32.totalorder %s917_s21, %s913_s20  ;;  %p48_p4 = scmp.eq.s32.totalorder %s994_s3, 0 }
   0xf   : > { %s1010_s28 = scalar_select %p32_p1, %s921_s22, %s34_s26  }
  0x10   : > { %p43_p5 = por %p42_p2, %p41_p0  ;;  %p1012_p6 = por %p48_p4, %p47_p3 }
  0x11   : > { %p134_p7 = scmp.eq.s32.totalorder %s994_s3, 1  ;;  %p140_p8 = scmp.eq.s32.totalorder %s662_s24, 1 }
  0x12   : > { %p713_p10 = scmp.lt.s32.totalorder %s925_s23, 2  ;;  %s195_s7 = sand.u32 1, %s921_s22  }
  0x13   : > { %p1019_p11 = por %p134_p7, %p41_p0  ;;  %p1023_p12 = por %p140_p8, %p47_p3 }
  0x14   : > { %s694_s8 = smul.u32 192, %s925_s23  ;;  %p1034_p13 = pnand %p713_p10, %p43_p5 }
  0x15   : > { %s1259_s30 = scalar_select %p1019_p11, 1, 0 }
  0x16   : > { %s1260_s6 = scalar_select %p1023_p12, 1, 0 }
  0x17   : > { %s693_s9 = smul.u32 12, %s195_s7  ;;  %s1032_s12 = scalar_lea.hbm %s1251_s0, %s694_s8 }
  0x18   : > { %s196_s16 = scalar_lea.sflag [#allocation4], %s195_s7  ;;  %s797_s17 = scalar_lea.hbm %s1032_s12, 192 }
  0x19   : > { %s199_s14 = scalar_lea.vmem [#allocation3], %s693_s9  ;;  %p798_p2 = scmp.ne.s32.totalorder %s1032_s12, %s797_s17 }
  0x1a   : > { %s207_s15 = sshll.u32 %s199_s14, 4  ;;  %p799_p3 = pneg %p1034_p13  ;;  %s1039_s15 = int_to_ptr.vmem [resolvable:$true] %s207_s15 }
  0x1b   : > { %s802_s24 = scalar_lea.hbm %s1251_s0, 384  ;;  %p803_p7 = scmp.lt.u32.totalorder %s1032_s12, %s1251_s0 }
  0x1c   : > { %p800_p4 = pnand %p799_p3, %p798_p2  ;;  %p804_p8 = scmp.lt.u32.totalorder %s802_s24, %s797_s17 }
  0x1d   : > { %p806_p9 = scmp.lt.u32.totalorder %s797_s17, %s1032_s12 }
  0x1e   : > { %p801_p5 = pneg %p800_p4  ;;  %p805_p10 = por %p804_p8, %p803_p7 }
  0x20   : > { %p807_p0 = por %p806_p9, %p805_p10 }
  0x22   : > { %p808_p1 = pnand %p807_p0, %p801_p5 }
  0x24   : > { %811 = shalt.err (!%p808_p1)
}
  0x25   : > { %s812_s7 = scalar_lea.vmem %s1039_s15, 192  ;;  %s927_s8 = smov [#allocation3]  }
  0x26   : > { %p813_p2 = scmp.ne.s32.totalorder %s1039_s15, %s812_s7  ;;  %s817_s9 = sshll.u32 %s927_s8, 4  ;;  %s818_s9 = int_to_ptr.vmem [resolvable:$false] %s817_s9 }
  0x27   : > { %s819_s10 = scalar_lea.vmem %s818_s9, 384  ;;  %p820_p11 = scmp.lt.s32.totalorder %s1039_s15, %s818_s9 }
  0x28   : > { %p815_p4 = pnand %p813_p2, %p799_p3  ;;  %p821_p7 = scmp.lt.s32.totalorder %s819_s10, %s812_s7 }
  0x2a   : > { %p816_p12 = pneg %p815_p4  ;;  %p822_p8 = por %p821_p7, %p820_p11 }
  0x2c   : > { %p823_p9 = pnand %p822_p8, %p816_p12 }
  0x2e   : > { %826 = shalt.err (!%p823_p9)
}
  0x2f   : > { %705 = dma.hbm_to_vmem [thread:$0]  (!%p1034_p13), %s1032_s12, 192, %s1039_s15, %s196_s16  }
  0x30   : > { %p1262_p0 = scmp.lt.s32.totalorder %s925_s23, 3  ;;  %p1263_p1 = scmp.ge.s32.totalorder %s925_s23, 1 }
  0x32   : > { %p213_p3 = pnand %p1263_p1, %p1262_p0 }
  0x33   : > { %s1072_s11 = sand.u32 (!%p213_p3), 1, %s917_s21  }
  0x34   : > { %216 = sbr.rel (%p213_p3) target bundleno = 464 (0x1d0), region = 36  ;;  %s219_s17 = scalar_lea.sflag (!%p213_p3), [#allocation4], %s1072_s11 }
  0x35   : > { %s695_s14 = smul.u32 (!%p213_p3), 12, %s1072_s11 }
  0x37   : > { %s222_s18 = scalar_lea.vmem (!%p213_p3), [#allocation3], %s695_s14 }
  0x3b   : > { %900 = dma.done.wait (%p1012_p6), %s219_s17, 192  }
  0x3c   : > { %902 = vsyncadd (%p1012_p6), %s219_s17, 4294967104  ;;  %v1080_v1 = vld [vmem:[%s222_s18] sm:$0xff]  ;;  %v255_v2 = vld [vmem:[%s222_s18 + $0x8] sm:$0xf]  ;;  %s928_s12 = smov 126   ;;  %s929_s13 = smov 112   ;;  %v256_v12 = vlaneseq }
  0x3d   : > { %301 = vrot.lane.b32.xlu1 %v1080_v1, %s928_s12  ;;  %314 = vrot.lane.b32.xlu0 %v1080_v1, %s929_s13  ;;  %v1086_v3 = vcombine.high %v1080_v1, %v1080_v1  ;;  %v367_v4 = vcombine.low %v255_v2, %v255_v2  ;;  %s930_s29 = smov 110   ;;  %s931_s15 = smov 127   ;;  %v366_v7 = vcombine.low %v1080_v1, %v1080_v1  ;;  %v935_v8 = vmov 0.0   ;;  %v425_v10 = vld [vmem:[%s1253_s2] sm:$0xff] }
  0x3e   : > { %s932_s16 = smov 96   ;;  %s933_s19 = smov 95   ;;  %499 = vmatprep.mubr.f32.mxu0 %v935_v8  ;;  %v936_v9 = vmov 0   ;;  %v672_v11 = vld [vmem:[#allocation2] ss:$0 sm:$0xff]  ;;  %v257_v13 = vand.u32 127, %v256_v12 }
  0x3f   : > { %v762_v5 = vpack.i.bf16 %v255_v2, %v1086_v3  ;;  %v767_v6 = vpack.i.bf16 %v367_v4, %v1080_v1  ;;  %s934_s24 = smov 111   ;;  %792 = vset.pattern.permute.xlu1 %v936_v9  ;;  %793 = vset.pattern.permute.xlu0 %v936_v9  ;;  %s937_s26 = smov 94   ;;  %vm320_vm0 = vcmask 916480   ;;  %vm307_vm4 = vcmask 1031168  }
  0x40   : > { %v258_v14 = vadd.s32 128, %v257_v13  ;;  %v263_v17 = vand.u32 15, %v257_v13  ;;  %vm374_vm5 = vcmask 1039360   ;;  %vm413_vm6 = vcmask 1043456   ;;  %s667_s10 = sshll.u32 %s1072_s11, 4  ;;  %s683_s14 = sshll.u32 %s994_s3, 8 }
  0x41   : > { %763 = vrot.lane.b32.xlu1 %v762_v5, %s928_s12  ;;  %758 = vrot.lane.b32.xlu0 %v762_v5, %s929_s13  ;;  %vm333_vm8 = vcmask 900096   ;;  %vm346_vm9 = vcmask 785408   ;;  %vm408_vm10 = vcmask 777216   ;;  %vm391_vm11 = vcmask 908288   ;;  %s253_s17 = scalar_lea.vmem [#allocation7], %s667_s10  ;;  %s1168_s12 = scalar_lea.vmem [#allocation6], %s667_s10 }
  0x42   : > { %v270_v18 = vand.u32 15, %v258_v14  ;;  %vm1105_vm2 = vcmp.ne.s32.totalorder %v263_v17, 0  ;;  %vm1123_vm7 = vcmp.ne.s32.totalorder %v263_v17, 15  ;;  %vm359_vm12 = vcmask 769024   ;;  %s560_s18 = sshll.u32 %s253_s17, 4  ;;  %s546_s13 = sshll.u32 %s1168_s12, 4  ;;  %s1176_s18 = int_to_ptr.vmem [resolvable:$true] %s560_s18  ;;  %s1184_s13 = int_to_ptr.vmem [resolvable:$true] %s546_s13 }
  0x43   : > { %v294_v44 = vsel %vm1105_vm2, %v1080_v1, 0.0  ;;  %vm431_vm13 = vcmask 326656   ;;  %s827_s27 = scalar_lea.vmem %s1176_s18, 256  ;;  %p1272_p11 = scmp.ne.s32.totalorder %s1259_s30, 0 }
  0x44   : > { %vm1101_vm1 = vcmp.ne.s32.totalorder %v270_v18, 0  ;;  %vm1109_vm3 = vcmp.ne.s32.totalorder %v270_v18, 15  ;;  %p828_p6 = scmp.ne.s32.totalorder %s1176_s18, %s827_s27  ;;  %s938_s7 = smov [#allocation7]  }
  0x45   : > { %773 = vrot.lane.b32.xlu1 %v762_v5, %s930_s29  ;;  %768 = vrot.lane.b32.xlu0 %v767_v6, %s931_s15  ;;  %v295_v37 = vsel %vm1101_vm1, %v1086_v3, 0.0  ;;  %s831_s8 = sshll.u32 %s938_s7, 4  ;;  %s832_s8 = int_to_ptr.vmem [resolvable:$false] %s831_s8 }
  0x46   : > { %p829_p12 = pnand %p828_p6, %p1272_p11  ;;  %s833_s9 = scalar_lea.vmem %s832_s8, 512 }
  0x47   : > { %p834_p5 = scmp.lt.s32.totalorder %s1176_s18, %s832_s8  ;;  %p835_p10 = scmp.lt.s32.totalorder %s833_s9, %s827_s27 }
  0x48   : > { %p830_p13 = pneg %p829_p12 }
  0x49   : > { %327 = vrot.lane.b32.xlu1 %v1080_v1, %s930_s29  ;;  %368 = vrot.lane.b32.xlu0 %v366_v7, %s931_s15  ;;  %p836_p2 = por %p835_p10, %p834_p5 }
  0x4b   : > { %p837_p4 = pnand %p836_p2, %p830_p13 }
  0x4d   : > { %340 = vrot.lane.b32.xlu1 %v1080_v1, %s932_s16  ;;  %778 = vrot.lane.b32.xlu0 %v762_v5, %s932_s16  ;;  %s1174_s16 = scalar_lea.hbm %s1256_s5, %s683_s14 }
  0x51   : > { %788 = vrot.lane.b32.xlu1 %v767_v6, %s933_s19  ;;  %783 = vrot.lane.b32.xlu0 %v762_v5, %s934_s24 }
  0x55   : > { %402 = vrot.lane.b32.xlu1 %v366_v7, %s933_s19  ;;  %385 = vrot.lane.b32.xlu0 %v1080_v1, %s934_s24  ;;  %s1182_s24 = scalar_lea.hbm %s1255_s4, %s683_s14 }
  0x59   : > { %357 = vrot.lane.b32.xlu1 %v255_v2, %s937_s26  ;;  %355 = vrot.lane.b32.xlu0 %v1086_v3, %s937_s26 }
  0x5d   : > { %353 = vrot.lane.b32.xlu0 %v1080_v1, %s937_s26  ;;  %428 = vperm.xlu1 %792, %v425_v10   ;;  %s532_s26 = scalar_lea.sflag [#allocation8], %s1072_s11 }
  0x61   : > { %515 = vperm.xlu0 %793, %v672_v11  }
  0xaf   : > { %v302_v15 = vpop.permute.xlu1 %301  ;;  %v315_v16 = vpop.permute.xlu0 %314 }
  0xb3   : > { %v764_v19 = vpop.permute.xlu1 %763  ;;  %v759_v20 = vpop.permute.xlu0 %758 }
  0xb4   : > { %v766_v23 = vunpack.i.h.bf16 %v764_v19  ;;  %v765_v24 = vunpack.i.l.bf16 %v764_v19  ;;  %v761_v25 = vunpack.i.h.bf16 %v759_v20  ;;  %v760_v26 = vunpack.i.l.bf16 %v759_v20 }
  0xb6   : > { %v321_v28 = vsel %vm320_vm0, %v315_v16, %v760_v26  ;;  %v322_v29 = vsel %vm320_vm0, %v760_v26, %v761_v25  ;;  %v309_v30 = vsel %vm307_vm4, %v765_v24, %v766_v23  ;;  %v308_v41 = vsel %vm307_vm4, %v302_v15, %v765_v24 }
  0xb7   : > { %v774_v31 = vpop.permute.xlu1 %773  ;;  %v769_v32 = vpop.permute.xlu0 %768  ;;  %v326_v33 = vsel %vm1101_vm1, %v322_v29, 0.0  ;;  %v325_v34 = vsel %vm1105_vm2, %v321_v28, 0.0  ;;  %v313_v38 = vsel %vm1109_vm3, %v309_v30, 0.0  ;;  %v312_v53 = vsel %vm1123_vm7, %v308_v41, 0.0 }
  0xb8   : > { %v771_v35 = vunpack.i.h.bf16 %v769_v32  ;;  %v770_v36 = vunpack.i.l.bf16 %v769_v32  ;;  %v382_v40 = vrot.slane %v326_v33, 4  ;;  %v381_v42 = vrot.slane %v325_v34, 4  ;;  %v424_v33 = vld [vmem:[%s1252_s1] sm:$0xff] }
  0xb9   : > { %v776_v45 = vunpack.i.h.bf16 %v774_v31  ;;  %v775_v46 = vunpack.i.l.bf16 %v774_v31 }
  0xba   : > { %v376_v43 = vsel %vm374_vm5, %v770_v36, %v771_v35  ;;  %v417_v50 = vsel %vm413_vm6, %v313_v38, %v382_v40  ;;  %v416_v55 = vsel %vm413_vm6, %v312_v53, %v381_v42 }
  0xbb   : > { %v328_v47 = vpop.permute.xlu1 %327  ;;  %v369_v48 = vpop.permute.xlu0 %368  ;;  %v415_v49 = vsel %vm413_vm6, %v295_v37, %v376_v43  ;;  %v335_v57 = vsel %vm333_vm8, %v775_v46, %v776_v45 }
  0xbc   : > { %v375_v51 = vsel %vm374_vm5, %v369_v48, %v770_v36  ;;  %v685_v52 = vpack.c.bf16 %v417_v50, %v415_v49  ;;  %v334_v60 = vsel %vm333_vm8, %v328_v47, %v775_v46  ;;  %v339_v63 = vsel %vm1109_vm3, %v335_v57, 0.0 }
  0xbd   : > { %v414_v54 = vsel %vm413_vm6, %v294_v44, %v375_v51  ;;  %v338_v0 = vsel %vm1123_vm7, %v334_v60, 0.0  ;;  %v399_v9 = vrot.slane %v339_v63, 4 }
  0xbe   : > { %686 = vmatprep.subr.bf16.mxu0 %v685_v52  ;;  %v687_v56 = vpack.c.bf16 %v416_v55, %v414_v54  ;;  %v398_v14 = vrot.slane %v338_v0, 4 }
  0xbf   : > { %v341_v58 = vpop.permute.xlu1 %340  ;;  %v779_v59 = vpop.permute.xlu0 %778 }
  0xc0   : > { %v781_v61 = vunpack.i.h.bf16 %v779_v59  ;;  %v780_v62 = vunpack.i.l.bf16 %v779_v59  ;;  %688 = vmatpush1.bf16.msra.mxu0 %v687_v56 }
  0xc2   : > { %v348_v1 = vsel %vm346_vm9, %v780_v62, %v781_v61  ;;  %v347_v10 = vsel %vm346_vm9, %v341_v58, %v780_v62 }
  0xc3   : > { %v789_v2 = vpop.permute.xlu1 %788  ;;  %v784_v3 = vpop.permute.xlu0 %783  ;;  %v352_v13 = vsel %vm1101_vm1, %v348_v1, 0.0  ;;  %v351_v19 = vsel %vm1105_vm2, %v347_v10, 0.0 }
  0xc4   : > { %v791_v4 = vunpack.i.h.bf16 %v789_v2  ;;  %v790_v5 = vunpack.i.l.bf16 %v789_v2  ;;  %v786_v6 = vunpack.i.h.bf16 %v784_v3  ;;  %v785_v7 = vunpack.i.l.bf16 %v784_v3 }
  0xc6   : > { %v410_v11 = vsel %vm408_vm10, %v790_v5, %v791_v4  ;;  %v393_v12 = vsel %vm391_vm11, %v785_v7, %v786_v6 }
  0xc7   : > { %v403_v15 = vpop.permute.xlu1 %402  ;;  %v386_v16 = vpop.permute.xlu0 %385  ;;  %v419_v17 = vsel %vm413_vm6, %v393_v12, %v399_v9  ;;  %v421_v18 = vsel %vm413_vm6, %v352_v13, %v410_v11 }
  0xc8   : > { %v409_v20 = vsel %vm408_vm10, %v403_v15, %v790_v5  ;;  %v392_v23 = vsel %vm391_vm11, %v386_v16, %v785_v7  ;;  %v689_v24 = vpack.c.bf16 %v421_v18, %v419_v17 }
  0xc9   : > { %v420_v25 = vsel %vm413_vm6, %v351_v19, %v409_v20  ;;  %v418_v21 = vsel %vm413_vm6, %v392_v23, %v398_v14 }
  0xca   : > { %690 = vmatprep.subr.bf16.mxu0 %v689_v24  ;;  %v691_v26 = vpack.c.bf16 %v420_v25, %v418_v21 }
  0xcb   : > { %v358_v28 = vpop.permute.xlu1 %357  ;;  %v356_v29 = vpop.permute.xlu0 %355 }
  0xcc   : > { %v361_v30 = vsel %vm359_vm12, %v356_v29, %v358_v28  ;;  %692 = vmatpush1.bf16.msra.mxu0 %v691_v26 }
  0xcd   : > { %v365_v22 = vsel %vm1109_vm3, %v361_v30, 0.0 }
  0xce   : > { %669 = vmatprep.subr.msk.mxu0 %vm413_vm6, %v365_v22 }
  0xcf   : > { %v354_v31 = vpop.permute.xlu0 %353 }
  0xd0   : > { %v360_v32 = vsel %vm359_vm12, %v354_v31, %v356_v29 }
  0xd1   : > { %v364_v34 = vsel %vm1123_vm7, %v360_v32, 0.0 }
  0xd2   : > { %670 = vmatpush1.msk.msra.mxu0 %vm413_vm6, %v364_v34 }
  0xd3   : > { %671 = vmatmul.mubr.msk.f32.vlgmr.msra.gmra.mrb[0].mxu0 %vm431_vm13, %v424_v33 }
  0xdc   : > { %v429_v35 = vpop.permute.xlu1 %428 }
  0xe0   : > { %v516_v36 = vpop.permute.xlu0 %515 }
 0x1a6   : > { %v501_v27 = vpop.f32.mrb[0].mxu0 }
 0x1a7   : > { %v502_v37 = vadd.f32 %v501_v27, %v429_v35  ;;  %v503_v38 = vpop.f32.mrb[1].mxu0 }
 0x1a8   : > { %v504_v39 = vadd.f32 %v503_v38, %v429_v35 }
 0x1a9   : > { %506 = vst [vmem:[%s253_s17] sm:$0xff] %v502_v37  ;;  %vm518_vm14 = vcmp.ge.f32.partialorder %v502_v37, %v516_v36 }
 0x1aa   : > { %507 = vst [vmem:[%s253_s17 + $0x8] sm:$0xff] %v504_v39  ;;  %vm519_vm15 = vcmp.ge.f32.partialorder %v504_v39, %v516_v36  ;;  %v673_v40 = vsel %vm518_vm14, 1.0, %v935_v8 }
 0x1ab   : > { %v674_v41 = vsel %vm519_vm15, 1.0, %v935_v8  ;;  %524 = vst [vmem:[%s1168_s12] sm:$0xff] %v673_v40 }
 0x1ac   : > { %840 = shalt.err (!%p837_p4)
}
 0x1ad   : > { %s841_s10 = scalar_lea.hbm %s1174_s16, 256  ;;  %s845_s29 = scalar_lea.hbm %s1256_s5, 512 }
 0x1ae   : > { %p842_p7 = scmp.ne.s32.totalorder %s1174_s16, %s841_s10  ;;  %p846_p0 = scmp.lt.u32.totalorder %s1174_s16, %s1256_s5 }
 0x1af   : > { %p847_p1 = scmp.lt.u32.totalorder %s845_s29, %s841_s10  ;;  %p849_p6 = scmp.lt.u32.totalorder %s841_s10, %s1174_s16 }
 0x1b0   : > { %p843_p8 = pnand %p842_p7, %p1272_p11 }
 0x1b1   : > { %p848_p3 = por %p847_p1, %p846_p0 }
 0x1b2   : > { %p844_p9 = pneg %p843_p8 }
 0x1b3   : > { %p850_p12 = por %p849_p6, %p848_p3 }
 0x1b5   : > { %p851_p13 = pnand %p850_p12, %p844_p9 }
 0x1b7   : > { %854 = shalt.err (!%p851_p13)
}
 0x1b8   : > { %699 = dma.vmem_to_hbm [thread:$0]  (%p1272_p11), %s1176_s18, 256, %s1174_s16, %s532_s26   ;;  %525 = vst [vmem:[%s1168_s12 + $0x8] sm:$0xff] %v674_v41 }
 0x1b9   : > { %s527_s19 = scalar_lea.sflag [#allocation5], %s1072_s11  ;;  %s855_s27 = scalar_lea.vmem %s1184_s13, 256 }
 0x1ba   : > { %p856_p5 = scmp.ne.s32.totalorder %s1184_s13, %s855_s27  ;;  %s939_s7 = smov [#allocation6]  }
 0x1bb   : > { %s859_s8 = sshll.u32 %s939_s7, 4  ;;  %s860_s8 = int_to_ptr.vmem [resolvable:$false] %s859_s8 }
 0x1bc   : > { %p857_p10 = pnand %p856_p5, %p1272_p11  ;;  %s861_s9 = scalar_lea.vmem %s860_s8, 512 }
 0x1bd   : > { %p862_p4 = scmp.lt.s32.totalorder %s1184_s13, %s860_s8  ;;  %p863_p7 = scmp.lt.s32.totalorder %s861_s9, %s855_s27 }
 0x1be   : > { %p858_p2 = pneg %p857_p10 }
 0x1bf   : > { %p864_p8 = por %p863_p7, %p862_p4 }
 0x1c1   : > { %p865_p9 = pnand %p864_p8, %p858_p2 }
 0x1c3   : > { %868 = shalt.err (!%p865_p9)
}
 0x1c4   : > { %s869_s11 = scalar_lea.hbm %s1182_s24, 256  ;;  %s873_s16 = scalar_lea.hbm %s1255_s4, 512 }
 0x1c5   : > { %p870_p0 = scmp.ne.s32.totalorder %s1182_s24, %s869_s11  ;;  %p874_p6 = scmp.lt.u32.totalorder %s1182_s24, %s1255_s4 }
 0x1c6   : > { %p875_p12 = scmp.lt.u32.totalorder %s873_s16, %s869_s11  ;;  %p877_p5 = scmp.lt.u32.totalorder %s869_s11, %s1182_s24 }
 0x1c7   : > { %p871_p1 = pnand %p870_p0, %p1272_p11 }
 0x1c8   : > { %p876_p13 = por %p875_p12, %p874_p6 }
 0x1c9   : > { %p872_p3 = pneg %p871_p1 }
 0x1ca   : > { %p878_p10 = por %p877_p5, %p876_p13 }
 0x1cc   : > { %p879_p2 = pnand %p878_p10, %p872_p3 }
 0x1ce   : > { %882 = shalt.err (!%p879_p2)
}
 0x1cf   : > { %698 = dma.vmem_to_hbm [thread:$0]  (%p1272_p11), %s1184_s13, 256, %s1182_s24, %s527_s19  }
 0x1d0 PF: > { %s572_s14 = sand.u32 1, %s913_s20   ;;  %p1273_p4 = scmp.ne.s32.totalorder %s1260_s6, 0 }
 0x1d1   : > { %p1274_p7 = scmp.ge.s32.totalorder %s925_s23, 2  ;;  %s573_s17 = scalar_lea.sflag [#allocation5], %s572_s14 }
 0x1d3   : > { %p707_p8 = pnand %p1274_p7, %p1273_p4 }
 0x1d5   : > { %904 = dma.done.wait (!%p707_p8), %s573_s17, 256  }
 0x1d6   : > { %906 = vsyncadd (!%p707_p8), %s573_s17, 4294967040  ;;  %s582_s29 = scalar_lea.sflag [#allocation8], %s572_s14 }
 0x1d7   : > { %908 = dma.done.wait (!%p707_p8), %s582_s29, 256  }
 0x1d8   : > { %910 = vsyncadd (!%p707_p8), %s582_s29, 4294967040  ;;  %p24_p11 = scmp.ge.s32.totalorder %s998_s25, 4   ;;  %s1275_s20 = smov %s917_s21 }
 0x1d9   : > { %s1276_s21 = smov %s921_s22  ;;  %s1277_s22 = smov %s1010_s28 }
 0x1da   : > { %s1278_s23 = smov %s998_s25  ;;  %26 = sbr.rel (!%p24_p11) target bundleno = 10 (0xa), region = 98 }
 0x1e1   :  { %587 = vsyncpa [#allocation4], 1 }
 0x1e2   :  { %589 = vsyncpa [#allocation4 + $0x1], 1 }
 0x1e3   :  { %590 = vsyncpa [#allocation5], 1 }
 0x1e4   :  { %592 = vsyncpa [#allocation5 + $0x1], 1 }
 0x1e5   :  { %593 = vsyncpa [#allocation8], 1 }
 0x1e6   :  { %595 = vsyncpa [#allocation8 + $0x1], 1 }

</bundles_post_ra>
